<compile_context>
chip_gen: v5e
topology: v5e:2x2
jax: 0.10.0
libtpu: 0.0.40
codegen_flags: <defaults>
</compile_context>

<pallas_src>
import functools
import math

import jax
import jax.numpy as jnp
from jax.experimental import pallas as pl
from jax.experimental.pallas import tpu as pltpu


# ----------------------------------------------------------------------------
# Tile selection helpers (fall back to full dims when the array is small or
# not divisible — full-extent blocks are always legal).
# ----------------------------------------------------------------------------
_TM_CANDS = (512, 256, 128, 64, 32, 16, 8)      # sublane-aligned
_TM_LN_CANDS = (256, 128, 64, 32, 16, 8)        # fused-LN dense keeps (tm, H) acc modest
_TN_CANDS = (512, 256, 128)                     # lane-aligned, MXU-wide outputs
_TK_CANDS = (512, 256, 128)
_TQ_CANDS = (128, 64, 32, 16, 8)                # attention query tile


def _pick(dim, candidates):
    for c in candidates:
        if dim >= c and dim % c == 0:
            return c
    return dim


# ----------------------------------------------------------------------------
# Tiled dense: x:[M,K] bf16 @ w:[K,N] bf16 + b:[N] f32 -> [M,N] bf16
# ----------------------------------------------------------------------------
def _dense_kernel(x_ref, w_ref, b_ref, o_ref, acc_ref, *, activation):
    @pl.when(pl.program_id(2) == 0)
    def _():
        acc_ref[...] = jnp.zeros_like(acc_ref)

    acc_ref[...] += jnp.dot(x_ref[...], w_ref[...],
                            preferred_element_type=jnp.float32)   # bf16 MXU, f32 acc

    @pl.when(pl.program_id(2) == pl.num_programs(2) - 1)
    def _():
        y = acc_ref[...] + b_ref[...]                             # (1, tn) broadcasts
        if activation == "gelu":
            # Exact erf GELU (HF default).  TODO(synk): tanh-approx GELU would
            # move this to the EUP slot if numerics allow (v5e VALU relief).
            y = 0.5 * y * (1.0 + jax.lax.erf(y * (1.0 / math.sqrt(2.0))))
        elif activation == "tanh":
            y = jnp.tanh(y)
        o_ref[...] = y.astype(o_ref.dtype)


def dense(x, w, b, activation=None):
    m, k = x.shape
    n = w.shape[1]
    tm, tn, tk = _pick(m, _TM_CANDS), _pick(n, _TN_CANDS), _pick(k, _TK_CANDS)
    grid = (m // tm, n // tn, k // tk)
    return pl.pallas_call(
        functools.partial(_dense_kernel, activation=activation),
        out_shape=jax.ShapeDtypeStruct((m, n), jnp.bfloat16),
        grid_spec=pltpu.PrefetchScalarGridSpec(
            num_scalar_prefetch=0,
            grid=grid,
            in_specs=[
                pl.BlockSpec((tm, tk), lambda i, j, kk: (i, kk)),
                pl.BlockSpec((tk, tn), lambda i, j, kk: (kk, j)),
                pl.BlockSpec((1, tn), lambda i, j, kk: (0, j)),
            ],
            out_specs=pl.BlockSpec((tm, tn), lambda i, j, kk: (i, j)),
            scratch_shapes=[pltpu.VMEM((tm, tn), jnp.float32)],
        ),
        compiler_params=pltpu.CompilerParams(
            dimension_semantics=("parallel", "parallel", "arbitrary")),
    )(x, w, b.reshape(1, n))


# ----------------------------------------------------------------------------
# Dense with fused residual-add + LayerNorm epilogue (N untiled so the full row
# is available for the LN statistics in the finalize branch).
#   out = LayerNorm(x @ w + b + residual) * gamma + beta       -> bf16 [M, N]
# ----------------------------------------------------------------------------
def _dense_add_ln_kernel(x_ref, w_ref, b_ref, r_ref, g_ref, beta_ref, o_ref, acc_ref):
    @pl.when(pl.program_id(1) == 0)
    def _():
        acc_ref[...] = jnp.zeros_like(acc_ref)

    acc_ref[...] += jnp.dot(x_ref[...], w_ref[...],
                            preferred_element_type=jnp.float32)

    @pl.when(pl.program_id(1) == pl.num_programs(1) - 1)
    def _():
        y = acc_ref[...] + b_ref[...] + r_ref[...].astype(jnp.float32)
        mu = jnp.mean(y, axis=-1, keepdims=True)
        var = jnp.mean(jnp.square(y - mu), axis=-1, keepdims=True)
        inv = jax.lax.rsqrt(var + 1e-12)
        o_ref[...] = ((y - mu) * inv * g_ref[...] + beta_ref[...]).astype(o_ref.dtype)


def dense_add_ln(x, w, b, residual, gamma, beta):
    m, k = x.shape
    n = w.shape[1]
    tm, tk = _pick(m, _TM_LN_CANDS), _pick(k, _TK_CANDS)
    grid = (m // tm, k // tk)
    return pl.pallas_call(
        _dense_add_ln_kernel,
        out_shape=jax.ShapeDtypeStruct((m, n), jnp.bfloat16),
        grid_spec=pltpu.PrefetchScalarGridSpec(
            num_scalar_prefetch=0,
            grid=grid,
            in_specs=[
                pl.BlockSpec((tm, tk), lambda i, kk: (i, kk)),
                pl.BlockSpec((tk, n), lambda i, kk: (kk, 0)),
                pl.BlockSpec((1, n), lambda i, kk: (0, 0)),
                pl.BlockSpec((tm, n), lambda i, kk: (i, 0)),     # residual
                pl.BlockSpec((1, n), lambda i, kk: (0, 0)),      # gamma
                pl.BlockSpec((1, n), lambda i, kk: (0, 0)),      # beta
            ],
            out_specs=pl.BlockSpec((tm, n), lambda i, kk: (i, 0)),
            scratch_shapes=[pltpu.VMEM((tm, n), jnp.float32)],
        ),
        compiler_params=pltpu.CompilerParams(
            dimension_semantics=("parallel", "arbitrary")),
    )(x, w, b.reshape(1, n), residual, gamma.reshape(1, n), beta.reshape(1, n))


# ----------------------------------------------------------------------------
# Standalone layernorm (embeddings), row-tiled, f32 stats, bf16 out
# ----------------------------------------------------------------------------
def _ln_kernel(x_ref, g_ref, b_ref, o_ref):
    x = x_ref[...].astype(jnp.float32)
    mu = jnp.mean(x, axis=-1, keepdims=True)
    var = jnp.mean(jnp.square(x - mu), axis=-1, keepdims=True)
    inv = jax.lax.rsqrt(var + 1e-12)
    o_ref[...] = ((x - mu) * inv * g_ref[...] + b_ref[...]).astype(o_ref.dtype)


def layernorm(x, gamma, beta):
    m, h = x.shape
    tm = _pick(m, _TM_LN_CANDS)
    row_spec = pl.BlockSpec((tm, h), lambda i: (i, 0))
    vec_spec = pl.BlockSpec((1, h), lambda i: (0, 0))
    return pl.pallas_call(
        _ln_kernel,
        out_shape=jax.ShapeDtypeStruct((m, h), jnp.bfloat16),
        grid=(m // tm,),
        in_specs=[row_spec, vec_spec, vec_spec],
        out_specs=row_spec,
        compiler_params=pltpu.CompilerParams(dimension_semantics=("parallel",)),
    )(x, gamma.reshape(1, h), beta.reshape(1, h))


# ----------------------------------------------------------------------------
# Attention: consumes the fused [B, S, 3H] qkv slab, writes [B, S, H].
# Grid (B, S//tq), both parallel.  Heads are split with STATIC lane slices
# inside the kernel (no XLA transposes / slices, no dynamic lane indexing).
# The full K/V slab for one batch element stays resident across the q tiles.
# ----------------------------------------------------------------------------
def _attn_kernel(qrow_ref, qkv_ref, bias_ref, o_ref, *, n_heads, d_head, hidden,
                 scale):
    bias = bias_ref[0, 0]                                      # (S,) f32 additive mask
    # TODO(synk): for very long S, stream K/V in blocks (flash-style online
    # softmax) instead of holding the full (S, 3H) slab resident.
    for h in range(n_heads):                                   # static head loop
        lo = h * d_head
        q = qrow_ref[0, :, lo:lo + d_head] * scale             # (tq, DH) bf16, scale folded
        k = qkv_ref[0, :, hidden + lo:hidden + lo + d_head]    # (S, DH) bf16
        v = qkv_ref[0, :, 2 * hidden + lo:2 * hidden + lo + d_head]
        s = jnp.einsum('qd,kd->qk', q, k,
                       preferred_element_type=jnp.float32)     # (tq, S) f32
        s = s + bias
        s = s - jnp.max(s, axis=-1, keepdims=True)
        p = jnp.exp(s)
        p = p * pl.reciprocal(jnp.sum(p, axis=-1, keepdims=True), approx=False)
        ctx = jnp.einsum('qk,kd->qd', p.astype(jnp.bfloat16), v,
                         preferred_element_type=jnp.float32)
        o_ref[0, :, lo:lo + d_head] = ctx.astype(o_ref.dtype)  # static lane-slice store


def attention(qkv, mask_bias, *, n_heads):
    """qkv: [B, S, 3H] bf16; mask_bias: [B, 1, S] f32 -> context [B, S, H] bf16."""
    B, S, H3 = qkv.shape
    H = H3 // 3
    DH = H // n_heads
    tq = _pick(S, _TQ_CANDS)
    kern = functools.partial(_attn_kernel, n_heads=n_heads, d_head=DH,
                             hidden=H, scale=1.0 / math.sqrt(DH))
    return pl.pallas_call(
        kern,
        out_shape=jax.ShapeDtypeStruct((B, S, H), jnp.bfloat16),
        grid=(B, S // tq),
        in_specs=[
            pl.BlockSpec((1, tq, H3), lambda b, qi: (b, qi, 0)),   # query rows
            pl.BlockSpec((1, S, H3), lambda b, qi: (b, 0, 0)),     # K/V rows (resident per b)
            pl.BlockSpec((1, 1, S), lambda b, qi: (b, 0, 0)),      # additive mask bias
        ],
        out_specs=pl.BlockSpec((1, tq, H), lambda b, qi: (b, qi, 0)),
        compiler_params=pltpu.CompilerParams(
            dimension_semantics=("parallel", "parallel")),
    )(qkv, qkv, mask_bias)


# ----------------------------------------------------------------------------
# Parameter init (deterministic, synthetic — no checkpoint load)
# ----------------------------------------------------------------------------
def init_params(key, *, vocab_size, hidden, n_layers, n_heads, intermediate,
                max_pos, type_vocab, project_dim):
    def nrm_f32(k, shape):
        return (0.02 * jax.random.normal(k, shape)).astype(jnp.float32)

    def nrm_w(k, shape):  # matmul weights stored bf16 (MXU inputs)
        return (0.02 * jax.random.normal(k, shape)).astype(jnp.bfloat16)

    keys = iter(jax.random.split(key, 8 + n_layers * 8))
    p = {
        "n_heads": n_heads,
        "word_emb": nrm_f32(next(keys), (vocab_size, hidden)),
        "pos_emb": nrm_f32(next(keys), (max_pos, hidden)),
        "type_emb": nrm_f32(next(keys), (type_vocab, hidden)),
        "emb_ln_g": jnp.ones((hidden,), jnp.float32),
        "emb_ln_b": jnp.zeros((hidden,), jnp.float32),
        "pool_w": nrm_w(next(keys), (hidden, hidden)),
        "pool_b": jnp.zeros((hidden,), jnp.float32),
        "layers": [],
    }
    if project_dim != 0:
        p["proj_w"] = nrm_w(next(keys), (hidden, project_dim))
        p["proj_b"] = jnp.zeros((project_dim,), jnp.float32)
    else:
        p["proj_w"] = None
        p["proj_b"] = None

    for _ in range(n_layers):
        lp = {
            # fused Q|K|V projection: one [H, 3H] matmul per layer
            "qkv_w": nrm_w(next(keys), (hidden, 3 * hidden)),
            "qkv_b": jnp.zeros((3 * hidden,), jnp.float32),
            "ao_w": nrm_w(next(keys), (hidden, hidden)),
            "ao_b": jnp.zeros((hidden,), jnp.float32),
            "aln_g": jnp.ones((hidden,), jnp.float32),
            "aln_b": jnp.zeros((hidden,), jnp.float32),
            "i_w": nrm_w(next(keys), (hidden, intermediate)),
            "i_b": jnp.zeros((intermediate,), jnp.float32),
            "o_w": nrm_w(next(keys), (intermediate, hidden)),
            "o_b": jnp.zeros((hidden,), jnp.float32),
            "oln_g": jnp.ones((hidden,), jnp.float32),
            "oln_b": jnp.zeros((hidden,), jnp.float32),
        }
        p["layers"].append(lp)
    return p


# ----------------------------------------------------------------------------
# Forward pass  (== BertEncoder.forward: BertModel + optional projection)
# ----------------------------------------------------------------------------
def bert_encoder_forward(params, input_ids, token_type_ids, attention_mask,
                         representation_token_pos=0, output_hidden_states=True):
    # NOTE: like the reference module, representation_token_pos is accepted but
    # the BERT pooler always uses the [CLS] token at position 0.
    B, S = input_ids.shape
    H = params["word_emb"].shape[1]
    NH = params["n_heads"]

    pos_ids = jnp.arange(S, dtype=jnp.int32)[None, :]
    emb = (params["word_emb"][input_ids]                       # XLA gathers (glue)
           + params["pos_emb"][pos_ids]
           + params["type_emb"][token_type_ids])
    x = layernorm(emb.reshape(B * S, H), params["emb_ln_g"], params["emb_ln_b"])
    # TODO(synk): HF embedding/attention dropout omitted (eval-mode / p=0 semantics).

    hidden_states = [x.reshape(B, S, H)] if output_hidden_states else None
    # Additive HF-style mask bias, hoisted out of the kernels.
    mask_bias = ((1.0 - attention_mask.astype(jnp.float32))
                 * -10000.0).reshape(B, 1, S)

    for lp in params["layers"]:
        qkv = dense(x, lp["qkv_w"], lp["qkv_b"])                       # bf16 [B*S, 3H]
        ctx = attention(qkv.reshape(B, S, 3 * H), mask_bias, n_heads=NH)  # bf16 [B,S,H]
        x = dense_add_ln(ctx.reshape(B * S, H), lp["ao_w"], lp["ao_b"],
                         residual=x, gamma=lp["aln_g"], beta=lp["aln_b"])
        inter = dense(x, lp["i_w"], lp["i_b"], activation="gelu")      # bf16 [B*S, I]
        x = dense_add_ln(inter, lp["o_w"], lp["o_b"],
                         residual=x, gamma=lp["oln_g"], beta=lp["oln_b"])
        if output_hidden_states:
            hidden_states.append(x.reshape(B, S, H))

    sequence_output = x.reshape(B, S, H)
    pooled_output = dense(sequence_output[:, 0, :], params["pool_w"],
                          params["pool_b"], activation="tanh")
    if params["proj_w"] is not None:
        pooled_output = dense(pooled_output, params["proj_w"], params["proj_b"])

    return (sequence_output, pooled_output,
            tuple(hidden_states) if output_hidden_states else None)


# ----------------------------------------------------------------------------
if __name__ == "__main__":
    B, S = 2, 8
    VOCAB, HIDDEN, N_LAYERS, N_HEADS = 50, 32, 2, 4
    INTERMEDIATE, MAX_POS, TYPE_VOCAB, PROJECT_DIM = 64, 16, 2, 16

    key = jax.random.PRNGKey(0)
    k_param, k_ids = jax.random.split(key)
    params = init_params(
        k_param, vocab_size=VOCAB, hidden=HIDDEN, n_layers=N_LAYERS,
        n_heads=N_HEADS, intermediate=INTERMEDIATE, max_pos=MAX_POS,
        type_vocab=TYPE_VOCAB, project_dim=PROJECT_DIM)

    input_ids = jax.random.randint(k_ids, (B, S), 0, VOCAB, dtype=jnp.int32)
    token_type_ids = jnp.zeros((B, S), dtype=jnp.int32)
    attention_mask = jnp.ones((B, S), dtype=jnp.int32).at[1, 6:].set(0)  # pad tail of seq 1

    seq_out, pooled, hiddens = bert_encoder_forward(
        params, input_ids, token_type_ids, attention_mask)

    jax.block_until_ready((seq_out, pooled, hiddens))
    assert seq_out.shape == (B, S, HIDDEN)
    assert pooled.shape == (B, PROJECT_DIM)
    assert len(hiddens) == N_LAYERS + 1
    print("KERNEL_OK")
</pallas_src>

<mosaic_0001>
module attributes {stable_mosaic.version = 11 : i64} {
  func.func @_ln_kernel(%arg0: i32, %arg1: memref<16x32xf32, #tpu.memory_space<vmem>>, %arg2: memref<1x32xf32, #tpu.memory_space<vmem>>, %arg3: memref<1x32xf32, #tpu.memory_space<vmem>>, %arg4: memref<16x32xbf16, #tpu.memory_space<vmem>>) attributes {dimension_semantics = [#tpu.dimension_semantics<parallel>], iteration_bounds = array<i64: 1>, scalar_prefetch = 0 : i64, scratch_operands = 0 : i64, tpu.core_type = #tpu.core_type<tc>, window_params = [{transform_indices = @transform_0, window_bounds = array<i64: 16, 32>}, {pipeline_mode = #tpu.pipeline_mode<synchronous>, transform_indices = @transform_1, window_bounds = array<i64: 1, 32>}, {pipeline_mode = #tpu.pipeline_mode<synchronous>, transform_indices = @transform_2, window_bounds = array<i64: 1, 32>}, {transform_indices = @transform_3, window_bounds = array<i64: 16, 32>}]} {
    %c0 = arith.constant 0 : index
    %c0_0 = arith.constant 0 : index
    %0 = vector.load %arg1[%c0, %c0_0] : memref<16x32xf32, #tpu.memory_space<vmem>>, vector<16x32xf32>
    %cst = arith.constant dense<0.000000e+00> : vector<16xf32>
    %1 = vector.multi_reduction <add>, %0, %cst [1] : vector<16x32xf32> to vector<16xf32>
    %2 = vector.shape_cast %1 : vector<16xf32> to vector<16x1xf32>
    %cst_1 = arith.constant 3.200000e+01 : f32
    %3 = vector.broadcast %cst_1 : f32 to vector<16x1xf32>
    %4 = arith.divf %2, %3 : vector<16x1xf32>
    %5 = vector.broadcast %4 : vector<16x1xf32> to vector<16x32xf32>
    %6 = arith.subf %0, %5 : vector<16x32xf32>
    %7 = arith.mulf %6, %6 : vector<16x32xf32>
    %cst_2 = arith.constant dense<0.000000e+00> : vector<16xf32>
    %8 = vector.multi_reduction <add>, %7, %cst_2 [1] : vector<16x32xf32> to vector<16xf32>
    %9 = vector.shape_cast %8 : vector<16xf32> to vector<16x1xf32>
    %cst_3 = arith.constant 3.200000e+01 : f32
    %10 = vector.broadcast %cst_3 : f32 to vector<16x1xf32>
    %11 = arith.divf %9, %10 : vector<16x1xf32>
    %cst_4 = arith.constant 9.99999996E-13 : f32
    %12 = vector.broadcast %cst_4 : f32 to vector<16x1xf32>
    %13 = arith.addf %11, %12 : vector<16x1xf32>
    %14 = math.rsqrt %13 : vector<16x1xf32>
    %15 = vector.broadcast %4 : vector<16x1xf32> to vector<16x32xf32>
    %16 = arith.subf %0, %15 : vector<16x32xf32>
    %17 = vector.broadcast %14 : vector<16x1xf32> to vector<16x32xf32>
    %18 = arith.mulf %16, %17 : vector<16x32xf32>
    %c0_5 = arith.constant 0 : index
    %c0_6 = arith.constant 0 : index
    %19 = vector.load %arg2[%c0_5, %c0_6] : memref<1x32xf32, #tpu.memory_space<vmem>>, vector<1x32xf32>
    %20 = vector.broadcast %19 : vector<1x32xf32> to vector<16x32xf32>
    %21 = arith.mulf %18, %20 : vector<16x32xf32>
    %c0_7 = arith.constant 0 : index
    %c0_8 = arith.constant 0 : index
    %22 = vector.load %arg3[%c0_7, %c0_8] : memref<1x32xf32, #tpu.memory_space<vmem>>, vector<1x32xf32>
    %23 = vector.broadcast %22 : vector<1x32xf32> to vector<16x32xf32>
    %24 = arith.addf %21, %23 : vector<16x32xf32>
    %25 = arith.truncf %24 : vector<16x32xf32> to vector<16x32xbf16>
    %c0_9 = arith.constant 0 : index
    %c0_10 = arith.constant 0 : index
    %26 = vector.load %arg4[%c0_9, %c0_10] : memref<16x32xbf16, #tpu.memory_space<vmem>>, vector<16x32xbf16>
    tpu.vector_store %arg4[%c0_9, %c0_10], %25 {strides = array<i32>} : memref<16x32xbf16, #tpu.memory_space<vmem>>, vector<16x32xbf16>,
    return
  }
  func.func @transform_0(%arg0: i32) -> (i32, i32) {
    %c0_i32 = arith.constant 0 : i32
    %c0_i32_0 = arith.constant 0 : i32
    return %arg0, %c0_i32 : i32, i32
  }
  func.func @transform_1(%arg0: i32) -> (i32, i32) {
    %c0_i32 = arith.constant 0 : i32
    %c0_i32_0 = arith.constant 0 : i32
    %c0_i32_1 = arith.constant 0 : i32
    return %c0_i32, %c0_i32_0 : i32, i32
  }
  func.func @transform_2(%arg0: i32) -> (i32, i32) {
    %c0_i32 = arith.constant 0 : i32
    %c0_i32_0 = arith.constant 0 : i32
    %c0_i32_1 = arith.constant 0 : i32
    return %c0_i32, %c0_i32_0 : i32, i32
  }
  func.func @transform_3(%arg0: i32) -> (i32, i32) {
    %c0_i32 = arith.constant 0 : i32
    %c0_i32_0 = arith.constant 0 : i32
    return %arg0, %c0_i32 : i32, i32
  }
}

</mosaic_0001>

<bundles_post_ra>
// kernel: tpu_custom_call.1
= control target key start
LH: loop header
LB: loop body
LE: loop exit
PB: predicated region body
PF: predicated region fallthrough
CT: control target
= control target key end

     0   :  { %8 = vsyncpa [#allocation3], 0  ;;  %s274_s0 = inlined_call_operand.hbm [shape: f32[16,32], index: 0, kind: input, shape index: {}]   ;;  %s275_s1 = inlined_call_operand.hbm [shape: f32[1,32], index: 1, kind: input, shape index: {}]   ;;  %s276_s2 = inlined_call_operand.vmem [shape: f32[1,32], index: 2, kind: input, shape index: {}]   ;;  %s277_s3 = inlined_call_operand.hbm [shape: bf16[16,32], index: 3, kind: output, shape index: {}]  }
   0x1   :  { %9 = vsyncpa [#allocation6], 0 }
   0x2   :  { %10 = vsyncpa [#allocation4], 0  ;;  %s15_s14 = sshll.u32 %s274_s0, 4  ;;  %s230_s15 = smov [#allocation2]   ;;  %s16_s14 = int_to_ptr.hbm [resolvable:$true] %s15_s14 }
   0x3   :  { %s17_s16 = sshll.u32 %s230_s15, 4  ;;  %s29_s19 = sshll.u32 %s275_s1, 4  ;;  %s18_s16 = int_to_ptr.vmem [resolvable:$true] %s17_s16  ;;  %s30_s19 = int_to_ptr.hbm [resolvable:$true] %s29_s19 }
   0x4   :  { %s231_s20 = smov 128   ;;  %s232_s21 = smov 8  }
   0x5   :  { %23 = dma.hbm_to_vmem [thread:$0]  %s16_s14, 256, %s18_s16, [#allocation3], %s231_s20, %s231_s20, %s232_s21  }
   0x6   :  { %s233_s22 = smov [#allocation5]  }
   0x7   :  { %s31_s23 = sshll.u32 %s233_s22, 4  ;;  %s32_s23 = int_to_ptr.vmem [resolvable:$true] %s31_s23 }
   0x8   :  { %34 = dma.hbm_to_vmem [thread:$0]  %s30_s19, 16, %s32_s23, [#allocation6]  }
   0x9   :  { %224 = dma.done.wait [#allocation3], 256  }
   0xa   :  { %225 = vsyncadd [#allocation3], 4294967040 }
   0xb   :  { %226 = dma.done.wait [#allocation6], 16  }
   0xc   :  { %227 = vsyncadd [#allocation6], 4294967280  ;;  %vm47_vm0 = vcmask 261120   ;;  %v45_v0 = vld [vmem:[#allocation2] sm:$0xff]  ;;  %v46_v2 = vld [vmem:[#allocation2 + $0x8] sm:$0xff]  ;;  %v234_v4 = vmov 32.0  }
   0xd   :  { %v48_v1 = vsel %vm47_vm0, %v45_v0, 0.0  ;;  %v51_v3 = vsel %vm47_vm0, %v46_v2, 0.0  ;;  %146 = vrcp.f32 %v234_v4  ;;  %v144_v35 = vld [vmem:[#allocation5] ss:$0 sm:$0xff]  ;;  %v145_v38 = vld [vmem:[%s276_s2] ss:$0 sm:$0xff] }
   0xe   :  { %49 = vadd.xlane.f32.xlu0 %v48_v1  ;;  %vm113_vm7 = vcmask 257024   ;;  %s235_s24 = smov [#allocation7]   ;;  %s122_s2 = sshll.u32 %s277_s3, 4  ;;  %s123_s2 = int_to_ptr.hbm [resolvable:$true] %s122_s2 }
   0xf   :  { %s120_s25 = sshll.u32 %s235_s24, 4  ;;  %s236_s28 = smov 64   ;;  %s121_s25 = int_to_ptr.vmem [resolvable:$true] %s120_s25 }
  0x10   :  { %s237_s29 = smov 4  }
  0x13   :  { %v147_v5 = vpop.eup %146 }
  0x14   :  { %v55_v6 = vmul.f32 32.0, %v147_v5  ;;  %vm59_vm1 = vweird.f32 %v147_v5 }
  0x16   :  { %52 = vadd.xlane.f32.xlu0 %v51_v3  ;;  %v56_v7 = vsub.f32 1.0, %v55_v6 }
  0x18   :  { %v57_v8 = vmul.f32 %v147_v5, %v56_v7 }
  0x1a   :  { %v58_v9 = vadd.f32 %v147_v5, %v57_v8 }
  0x1c   :  { %v60_v10 = vsel %vm59_vm1, %v147_v5, %v58_v9 }
  0x81   :  { %v50_v11 = vpop.xlane.xlu0 %49 }
  0x82   :  { %v61_v12 = vmul.f32 %v60_v10, %v50_v11 }
  0x84   :  { %v63_v13 = vsub.f32 %v45_v0, %v61_v12 }
  0x86   :  { %v65_v14 = vmul.f32 %v63_v13, %v63_v13 }
  0x88   :  { %v67_v15 = vsel %vm47_vm0, %v65_v14, 0.0 }
  0x89   :  { %68 = vadd.xlane.f32.xlu1 %v67_v15  ;;  %v53_v16 = vpop.xlane.xlu0 %52 }
  0x8a   :  { %v62_v17 = vmul.f32 %v60_v10, %v53_v16 }
  0x8c   :  { %v64_v18 = vsub.f32 %v46_v2, %v62_v17 }
  0x8e   :  { %v66_v19 = vmul.f32 %v64_v18, %v64_v18 }
  0x90   :  { %v70_v20 = vsel %vm47_vm0, %v66_v19, 0.0 }
  0x91   :  { %71 = vadd.xlane.f32.xlu1 %v70_v20 }
  0xfc   :  { %v69_v21 = vpop.xlane.xlu1 %68 }
  0xfd   :  { %v73_v22 = vmul.f32 %v69_v21, %v60_v10 }
  0xff   :  { %v75_v23 = vadd.f32 1e-12, %v73_v22 }
 0x101   :  { %148 = vrsqrt.f32 %v75_v23  ;;  %vm83_vm3 = vweird.f32 %v75_v23 }
 0x104   :  { %v72_v24 = vpop.xlane.xlu1 %71 }
 0x105   :  { %v74_v25 = vmul.f32 %v72_v24, %v60_v10 }
 0x107   :  { %v149_v26 = vpop.eup %148  ;;  %v76_v27 = vadd.f32 1e-12, %v74_v25 }
 0x108   :  { %v78_v28 = vmul.f32 %v149_v26, %v75_v23  ;;  %vm84_vm2 = vweird.f32 %v149_v26 }
 0x109   :  { %150 = vrsqrt.f32 %v76_v27  ;;  %vm85_vm4 = vmor %vm83_vm3, %vm84_vm2  ;;  %vm93_vm6 = vweird.f32 %v76_v27 }
 0x10a   :  { %v79_v29 = vmul.f32 %v149_v26, %v78_v28 }
 0x10c   :  { %v80_v30 = vmul.f32 0.5, %v79_v29 }
 0x10e   :  { %v81_v31 = vsub.f32 1.5, %v80_v30 }
 0x10f   :  { %v151_v32 = vpop.eup %150 }
 0x110   :  { %v82_v33 = vmul.f32 %v149_v26, %v81_v31  ;;  %v88_v34 = vmul.f32 %v151_v32, %v76_v27  ;;  %vm94_vm5 = vweird.f32 %v151_v32 }
 0x111   :  { %vm95_vm8 = vmor %vm93_vm6, %vm94_vm5 }
 0x112   :  { %v86_v36 = vsel %vm85_vm4, %v149_v26, %v82_v33  ;;  %v89_v37 = vmul.f32 %v151_v32, %v88_v34 }
 0x113   :  { %v97_v39 = vmul.f32 %v86_v36, %v63_v13 }
 0x114   :  { %v90_v40 = vmul.f32 0.5, %v89_v37 }
 0x115   :  { %v103_v41 = vmul.f32 %v144_v35, %v97_v39 }
 0x116   :  { %v91_v42 = vsub.f32 1.5, %v90_v40 }
 0x117   :  { %v109_v43 = vadd.f32 %v145_v38, %v103_v41 }
 0x118   :  { %v92_v44 = vmul.f32 %v151_v32, %v91_v42 }
 0x119   :  { %v111_v45 = vpack.c.bf16 %v109_v43, %v109_v43 }
 0x11a   :  { %v96_v46 = vsel %vm95_vm8, %v151_v32, %v92_v44 }
 0x11b   :  { %v98_v47 = vmul.f32 %v96_v46, %v64_v18  ;;  %114 = vst.msk [vmem:[#allocation7] sm:$0xf] %vm113_vm7, %v111_v45 }
 0x11d   :  { %v104_v48 = vmul.f32 %v144_v35, %v98_v47 }
 0x11f   :  { %v110_v49 = vadd.f32 %v145_v38, %v104_v48 }
 0x121   :  { %v112_v50 = vpack.c.bf16 %v110_v49, %v110_v49 }
 0x123   :  { %115 = vst.msk [vmem:[#allocation7 + $0x4] sm:$0xf] %vm113_vm7, %v112_v50 }
 0x124   :  { %128 = dma.vmem_to_hbm [thread:$0]  %s121_s25, 128, %s123_s2, [#allocation4], %s236_s28, %s236_s28, %s237_s29  }
 0x125   :  { %228 = dma.done.wait [#allocation4], 128  }
 0x126   :  { %229 = vsyncadd [#allocation4], 4294967168 }
 0x127   :  { %133 = vsyncpa [#allocation3], 1 }
 0x128   :  { %134 = vsyncpa [#allocation6], 1 }
 0x129   :  { %135 = vsyncpa [#allocation4], 1 }

</bundles_post_ra>
